<compile_context>
chip_gen: v6e
topology: v6e:2x2x1
jax: 0.10.0
libtpu: 0.0.40
codegen_flags: <defaults>
</compile_context>

<pallas_src>
import functools

import jax
import jax.numpy as jnp
from jax import lax
from jax.experimental import pallas as pl
from jax.experimental.pallas import tpu as pltpu

_LEAKY_SLOPE = 0.01
_NEG = -1e30  # finite "-inf" so max/exp algebra never produces inf/nan


def _egat_kernel(src_ref, dst_ref, nfeat_ref, efeat_ref,
                 w_all_ref, w_fij_ref, bias_ref, attn_sum_ref, head_bcast_ref,
                 *rest, with_attention):
    if with_attention:
        n_out_ref, e_out_ref, att_ref, proj_sc, m_sc, l_sc, acc_sc = rest
    else:
        n_out_ref, e_out_ref, proj_sc, m_sc, l_sc, acc_sc = rest
        att_ref = None

    f32, bf16 = jnp.float32, jnp.bfloat16
    N = nfeat_ref.shape[0]
    tE = efeat_ref.shape[0]
    HFe = bias_ref.shape[1]
    H = attn_sum_ref.shape[1]
    HFn = head_bcast_ref.shape[1]

    phase = pl.program_id(0)       # 0: softmax stats pass, 1: normalize/aggregate pass
    tile = pl.program_id(1)
    last_tile = pl.num_programs(1) - 1

    dot = functools.partial(jnp.dot, preferred_element_type=f32)

    def dotg(a, b, contract):
        return lax.dot_general(a, b, dimension_numbers=(contract, ((), ())),
                               preferred_element_type=f32)

    # ---- one-time init: fused node projections + softmax/aggregation state ----
    @pl.when(jnp.logical_and(phase == 0, tile == 0))
    def _init():
        proj_sc[...] = dot(nfeat_ref[...], w_all_ref[...]).astype(bf16)  # (N, 2HFe+HFn)
        m_sc[...] = jnp.full_like(m_sc, _NEG)
        l_sc[...] = jnp.zeros_like(l_sc)
        acc_sc[...] = jnp.zeros_like(acc_sc)

    # ---- per-edge-tile one-hot incidences built in-kernel (no (E,N) HBM traffic) ----
    lane = lax.broadcasted_iota(jnp.int32, (tE, N), 1)
    S_b = (lane == src_ref[...]).astype(bf16)            # (tE, N) src one-hot (bf16, exact)
    D_mask = lane == dst_ref[...]                        # (tE, N) dst one-hot (bool)
    D_b = D_mask.astype(bf16)
    D_f = D_mask.astype(f32)

    # ---- edge features: gather(u)+gather(v)+edge projection (bf16 MXU, f32 acc) ----
    f_ni_e = dot(S_b, proj_sc[:, 0:HFe])                 # (tE, HFe)
    f_nj_e = dot(D_b, proj_sc[:, HFe:2 * HFe])           # (tE, HFe)
    f_fij = dot(efeat_ref[...], w_fij_ref[...])          # (tE, HFe)
    f_edge = f_ni_e + f_nj_e + f_fij + bias_ref[...]
    f_out = jnp.maximum(f_edge, _LEAKY_SLOPE * f_edge)   # leaky_relu(0.01)

    # ---- per-head attention logits; attn weights folded into the reduce matrix ----
    scores = dot(f_out, attn_sum_ref[...])               # (tE, H) f32

    # ---- pass 0: running per-destination segment max + softmax denominator ----
    @pl.when(phase == 0)
    def _stats():
        cols = [jnp.max(jnp.where(D_mask, scores[:, h:h + 1], _NEG),
                        axis=0, keepdims=True) for h in range(H)]
        m_tile = jnp.concatenate(cols, axis=0)                   # (H, N) tile segment max
        m_old = m_sc[...]
        m_new = jnp.maximum(m_old, m_tile)
        alpha = jnp.exp(m_old - m_new)                           # finite (NEG is finite)
        m_e = dotg(D_f, m_new, ((1,), (1,)))                     # (tE, H) gather to edges
        p_exp = jnp.exp(scores - m_e)
        l_seg = dotg(p_exp, D_f, ((0,), (0,)))                   # (H, N) segment sum
        l_sc[...] = alpha * l_sc[...] + l_seg
        m_sc[...] = m_new

    # ---- pass 1: normalize, store edge outputs, aggregate onto destinations ----
    @pl.when(phase == 1)
    def _aggregate():
        e_out_ref[...] = f_out.astype(e_out_ref.dtype)

        l_safe = jnp.maximum(l_sc[...], 1e-30)
        inv_l = pl.reciprocal(l_safe, approx=True)               # EUP slot
        inv_l = inv_l * (2.0 - l_safe * inv_l)                   # one Newton step
        m_e = dotg(D_f, m_sc[...], ((1,), (1,)))                 # (tE, H)
        inv_e = dotg(D_f, inv_l, ((1,), (1,)))                   # (tE, H)
        a = jnp.exp(scores - m_e) * inv_e                        # (tE, H) attention

        if att_ref is not None:
            pad = att_ref.shape[1] - H
            if pad > 0:
                a_slab = jnp.concatenate([a, jnp.zeros((tE, pad), f32)], axis=1)
            else:
                a_slab = a
            att_ref[...] = a_slab                                # lane-dense store

        h_src_e = dot(S_b, proj_sc[:, 2 * HFe:2 * HFe + HFn])    # (tE, HFn) src gather
        a_bcast = dot(a, head_bcast_ref[...])                    # (tE, HFn) replicate / Fn
        weighted = (h_src_e * a_bcast).astype(bf16)
        acc_sc[...] += dotg(D_b, weighted, ((0,), (0,)))         # (N, HFn) segment sum

    @pl.when(jnp.logical_and(phase == 1, tile == last_tile))
    def _finalize():
        n_out_ref[...] = acc_sc[...].astype(n_out_ref.dtype)


def egat_block(n_feats, e_feats, src, dst, params, *, num_heads, out_node_feats,
               out_edge_feats, get_attention=False, edge_tile=None):
    """EGATBlock.forward(g, n_feats, e_feats, get_attention) as one Pallas program.

    The DGL graph `g` is represented by explicit (src, dst) int32 edge-index arrays.
    """
    N, Dn = n_feats.shape
    E, De = e_feats.shape
    H, Fn, Fe = num_heads, out_node_feats, out_edge_feats
    HFe, HFn = H * Fe, H * Fn
    f32, bf16 = jnp.float32, jnp.bfloat16

    if edge_tile is None:
        edge_tile = min(256, E)
    tE = max(8, 8 * ((edge_tile + 7) // 8))
    n_tiles = (E + tE - 1) // tE
    E_pad = n_tiles * tE

    # pad edges; sentinel node index N matches no lane -> zero one-hot row
    src_i = jnp.full((E_pad, 1), N, jnp.int32).at[:E, 0].set(src.astype(jnp.int32))
    dst_i = jnp.full((E_pad, 1), N, jnp.int32).at[:E, 0].set(dst.astype(jnp.int32))
    ef = jnp.zeros((E_pad, De), bf16).at[:E].set(e_feats.astype(bf16))
    nf = n_feats.astype(bf16)

    w_all = jnp.concatenate(
        [params["w_ni"], params["w_nj"], params["w_node"]], axis=1).astype(bf16)
    w_fij = params["w_fij"].astype(bf16)
    bias = params["bias"].reshape(1, HFe).astype(f32)
    block_eye = jnp.repeat(jnp.eye(H, dtype=f32), Fe, axis=0)            # (HFe, H)
    attn_sum = block_eye * params["attn"].reshape(HFe, 1)                # attn folded in
    head_bcast = jnp.repeat(jnp.eye(H, dtype=f32), Fn, axis=1)           # (H, HFn)

    att_pad = 128 * (-(-H // 128))                                       # lane-dense slab

    grid = (2, n_tiles)                     # axis 0: pass, axis 1: edge tiles
    edge_map = lambda p, t: (t, 0)
    full_map = lambda p, t: (0, 0)
    late_map = lambda p, t: (p * t, 0)      # block only advances during pass 1

    in_specs = [
        pl.BlockSpec((tE, 1), edge_map),                # src indices
        pl.BlockSpec((tE, 1), edge_map),                # dst indices
        pl.BlockSpec((N, Dn), full_map),                # node feats (resident)
        pl.BlockSpec((tE, De), edge_map),               # edge feats (tiled)
        pl.BlockSpec((Dn, 2 * HFe + HFn), full_map),    # fused node weights
        pl.BlockSpec((De, HFe), full_map),              # edge weight
        pl.BlockSpec((1, HFe), full_map),               # bias
        pl.BlockSpec((HFe, H), full_map),               # attn-scaled head reduce
        pl.BlockSpec((H, HFn), full_map),               # head broadcast
    ]
    out_shape = [jax.ShapeDtypeStruct((N, HFn), f32),
                 jax.ShapeDtypeStruct((E_pad, HFe), f32)]
    out_specs = [pl.BlockSpec((N, HFn), full_map),
                 pl.BlockSpec((tE, HFe), late_map)]
    if get_attention:
        out_shape.append(jax.ShapeDtypeStruct((E_pad, att_pad), f32))
        out_specs.append(pl.BlockSpec((tE, att_pad), late_map))

    scratch_shapes = [
        pltpu.VMEM((N, 2 * HFe + HFn), bf16),   # node projections (f_ni | f_nj | h_proj)
        pltpu.VMEM((H, N), f32),                # running per-dst max
        pltpu.VMEM((H, N), f32),                # per-dst softmax denominator
        pltpu.VMEM((N, HFn), f32),              # h_out accumulator
    ]

    kern = functools.partial(_egat_kernel, with_attention=get_attention)
    outs = pl.pallas_call(
        kern,
        grid=grid,
        in_specs=in_specs,
        out_specs=tuple(out_specs),
        out_shape=tuple(out_shape),
        scratch_shapes=scratch_shapes,
        compiler_params=pltpu.CompilerParams(
            dimension_semantics=("arbitrary", "arbitrary"),
            vmem_limit_bytes=64 * 1024 * 1024),
    )(src_i, dst_i, nf, ef, w_all, w_fij, bias, attn_sum, head_bcast)

    n_out = outs[0].reshape(N, H, Fn)
    e_out = outs[1][:E].reshape(E, H, Fe)
    if get_attention:
        att = outs[2][:E, :H].reshape(E, H, 1)
        return n_out, e_out, att
    return n_out, e_out


def init_egat_params(key, in_node_feats, in_edge_feats, out_node_feats,
                     out_edge_feats, num_heads):
    """Deterministic EGATConv parameters. Linear weights stored (in, out) so the
    kernel computes x @ W (equivalent to PyTorch x @ W.T with W pre-transposed)."""
    H, Fn, Fe = num_heads, out_node_feats, out_edge_feats
    k = jax.random.split(key, 6)

    def xavier(kk, fan_in, fan_out):
        bound = (6.0 / (fan_in + fan_out)) ** 0.5
        return jax.random.uniform(kk, (fan_in, fan_out), jnp.float32, -bound, bound)

    return dict(
        w_ni=xavier(k[0], in_node_feats, H * Fe),
        w_nj=xavier(k[1], in_node_feats, H * Fe),
        w_fij=xavier(k[2], in_edge_feats, H * Fe),
        w_node=xavier(k[3], in_node_feats, H * Fn),
        attn=0.5 * jax.random.normal(k[4], (1, H, Fe), jnp.float32),
        bias=0.1 * jax.random.normal(k[5], (H * Fe,), jnp.float32),
    )


def egat_reference(n_feats, e_feats, src, dst, params, *, num_heads,
                   out_node_feats, out_edge_feats):
    """Pure-JAX reference (same math as DGL EGATConv) for correctness checking."""
    H, Fn, Fe = num_heads, out_node_feats, out_edge_feats
    N, E = n_feats.shape[0], e_feats.shape[0]
    dot = functools.partial(jnp.dot, precision=jax.lax.Precision.HIGHEST)

    f_ni = dot(n_feats, params["w_ni"])
    f_nj = dot(n_feats, params["w_nj"])
    f_fij = dot(e_feats, params["w_fij"])
    f_edge = f_ni[src] + f_nj[dst] + f_fij + params["bias"].reshape(1, H * Fe)
    f_out = jnp.where(f_edge >= 0, f_edge, _LEAKY_SLOPE * f_edge).reshape(E, H, Fe)

    scores = (f_out * params["attn"].reshape(1, H, Fe)).sum(-1)          # (E, H)
    smax = jax.ops.segment_max(scores, dst, num_segments=N)
    p = jnp.exp(scores - smax[dst])
    denom = jax.ops.segment_sum(p, dst, num_segments=N)
    a = p / denom[dst]

    h_proj = dot(n_feats, params["w_node"]).reshape(N, H, Fn)
    msg = h_proj[src] * a[:, :, None]
    h_out = jax.ops.segment_sum(msg, dst, num_segments=N)
    return h_out, f_out, a[:, :, None]


if __name__ == "__main__":
    # Small shapes consistent with EGATBlock(in_node, in_edge, out_node, out_edge, heads);
    # H*Fe = H*Fn = 128 keeps the main kernel outputs lane-dense.
    num_nodes = 8
    in_node_feats, in_edge_feats = 32, 16
    out_node_feats, out_edge_feats, num_heads = 32, 32, 4

    key = jax.random.PRNGKey(0)
    kn, ke, kp = jax.random.split(key, 3)
    n_feats = jax.random.normal(kn, (num_nodes, in_node_feats), jnp.float32)

    # deterministic small graph: each node i has edges to (i+1)%N and (i+3)%N -> E=16
    base = jnp.arange(num_nodes, dtype=jnp.int32)
    src = jnp.concatenate([base, base])
    dst = jnp.concatenate([(base + 1) % num_nodes, (base + 3) % num_nodes])
    num_edges = int(src.shape[0])
    e_feats = jax.random.normal(ke, (num_edges, in_edge_feats), jnp.float32)

    params = init_egat_params(kp, in_node_feats, in_edge_feats,
                              out_node_feats, out_edge_feats, num_heads)

    # edge_tile=8 -> grid (2, 2): exercises the multi-tile two-pass accumulation.
    n_out, e_out, att = egat_block(
        n_feats, e_feats, src, dst, params,
        num_heads=num_heads, out_node_feats=out_node_feats,
        out_edge_feats=out_edge_feats, get_attention=True, edge_tile=8)
    jax.block_until_ready((n_out, e_out, att))

    # attention-free call exercises the elided-attention-output kernel variant
    n_out2, e_out2 = egat_block(
        n_feats, e_feats, src, dst, params,
        num_heads=num_heads, out_node_feats=out_node_feats,
        out_edge_feats=out_edge_feats, get_attention=False, edge_tile=8)
    jax.block_until_ready((n_out2, e_out2))

    n_ref, e_ref, a_ref = egat_reference(
        n_feats, e_feats, src, dst, params,
        num_heads=num_heads, out_node_feats=out_node_feats,
        out_edge_feats=out_edge_feats)

    assert n_out.shape == (num_nodes, num_heads, out_node_feats)
    assert e_out.shape == (num_edges, num_heads, out_edge_feats)
    assert att.shape == (num_edges, num_heads, 1)
    assert bool(jnp.allclose(n_out, n_ref, rtol=1e-2, atol=1e-2))
    assert bool(jnp.allclose(e_out, e_ref, rtol=1e-2, atol=1e-2))
    assert bool(jnp.allclose(att, a_ref, rtol=1e-2, atol=1e-2))
    assert bool(jnp.allclose(n_out2, n_ref, rtol=1e-2, atol=1e-2))
    assert bool(jnp.allclose(e_out2, e_ref, rtol=1e-2, atol=1e-2))
    print("KERNEL_OK")
</pallas_src>

<mosaic_0001>
module attributes {stable_mosaic.version = 11 : i64} {
  func.func @_egat_kernel(%arg0: i32, %arg1: i32, %arg2: memref<8x1xi32, #tpu.memory_space<vmem>>, %arg3: memref<8x1xi32, #tpu.memory_space<vmem>>, %arg4: memref<8x32xbf16, #tpu.memory_space<vmem>>, %arg5: memref<8x16xbf16, #tpu.memory_space<vmem>>, %arg6: memref<32x384xbf16, #tpu.memory_space<vmem>>, %arg7: memref<16x128xbf16, #tpu.memory_space<vmem>>, %arg8: memref<1x128xf32, #tpu.memory_space<vmem>>, %arg9: memref<128x4xf32, #tpu.memory_space<vmem>>, %arg10: memref<4x128xf32, #tpu.memory_space<vmem>>, %arg11: memref<8x128xf32, #tpu.memory_space<vmem>>, %arg12: memref<8x128xf32, #tpu.memory_space<vmem>>, %arg13: memref<8x128xf32, #tpu.memory_space<vmem>>, %arg14: memref<8x384xbf16, #tpu.memory_space<vmem>>, %arg15: memref<4x8xf32, #tpu.memory_space<vmem>>, %arg16: memref<4x8xf32, #tpu.memory_space<vmem>>, %arg17: memref<8x128xf32, #tpu.memory_space<vmem>>) attributes {dimension_semantics = [#tpu.dimension_semantics<arbitrary>, #tpu.dimension_semantics<arbitrary>], iteration_bounds = array<i64: 2, 2>, scalar_prefetch = 0 : i64, scratch_operands = 4 : i64, tpu.core_type = #tpu.core_type<tc>, window_params = [{transform_indices = @transform_0, window_bounds = array<i64: 8, 1>}, {transform_indices = @transform_1, window_bounds = array<i64: 8, 1>}, {pipeline_mode = #tpu.pipeline_mode<synchronous>, transform_indices = @transform_2, window_bounds = array<i64: 8, 32>}, {transform_indices = @transform_3, window_bounds = array<i64: 8, 16>}, {pipeline_mode = #tpu.pipeline_mode<synchronous>, transform_indices = @transform_4, window_bounds = array<i64: 32, 384>}, {pipeline_mode = #tpu.pipeline_mode<synchronous>, transform_indices = @transform_5, window_bounds = array<i64: 16, 128>}, {pipeline_mode = #tpu.pipeline_mode<synchronous>, transform_indices = @transform_6, window_bounds = array<i64: 1, 128>}, {pipeline_mode = #tpu.pipeline_mode<synchronous>, transform_indices = @transform_7, window_bounds = array<i64: 128, 4>}, {pipeline_mode = #tpu.pipeline_mode<synchronous>, transform_indices = @transform_8, window_bounds = array<i64: 4, 128>}, {pipeline_mode = #tpu.pipeline_mode<synchronous>, transform_indices = @transform_9, window_bounds = array<i64: 8, 128>}, {transform_indices = @transform_10, window_bounds = array<i64: 8, 128>}, {transform_indices = @transform_11, window_bounds = array<i64: 8, 128>}]} {
    %c0_i32 = arith.constant 0 : i32
    %0 = arith.cmpi eq, %arg0, %c0_i32 : i32
    %c0_i32_0 = arith.constant 0 : i32
    %1 = arith.cmpi eq, %arg1, %c0_i32_0 : i32
    %2 = arith.andi %0, %1 : i1
    %3 = arith.extui %2 : i1 to i32
    %c0_i32_1 = arith.constant 0 : i32
    %4 = arith.cmpi ne, %3, %c0_i32_1 : i32
    scf.if %4 {
      %c0_26 = arith.constant 0 : index
      %c0_27 = arith.constant 0 : index
      %48 = vector.load %arg4[%c0_26, %c0_27] : memref<8x32xbf16, #tpu.memory_space<vmem>>, vector<8x32xbf16>
      %c0_28 = arith.constant 0 : index
      %c0_29 = arith.constant 0 : index
      %49 = vector.load %arg6[%c0_28, %c0_29] : memref<32x384xbf16, #tpu.memory_space<vmem>>, vector<32x384xbf16>
      %cst_30 = arith.constant dense<0.000000e+00> : vector<8x384xf32>
      %50 = tpu.matmul %48, %49, %cst_30 {dimension_numbers = #tpu.dot_dimension_numbers<[1], [0], [0], [1], [0, 0, 1, 1], [], []>} : vector<8x32xbf16>, vector<32x384xbf16>, vector<8x384xf32> -> vector<8x384xf32>
      %51 = arith.truncf %50 : vector<8x384xf32> to vector<8x384xbf16>
      %c0_31 = arith.constant 0 : index
      %c0_32 = arith.constant 0 : index
      %52 = vector.load %arg14[%c0_31, %c0_32] : memref<8x384xbf16, #tpu.memory_space<vmem>>, vector<8x384xbf16>
      tpu.vector_store %arg14[%c0_31, %c0_32], %51 {strides = array<i32>} : memref<8x384xbf16, #tpu.memory_space<vmem>>, vector<8x384xbf16>,
      %cst_33 = arith.constant -1.000000e+30 : f32
      %53 = vector.broadcast %cst_33 : f32 to vector<4x8xf32>
      %c0_34 = arith.constant 0 : index
      %c0_35 = arith.constant 0 : index
      %54 = vector.load %arg15[%c0_34, %c0_35] : memref<4x8xf32, #tpu.memory_space<vmem>>, vector<4x8xf32>
      tpu.vector_store %arg15[%c0_34, %c0_35], %53 {strides = array<i32>} : memref<4x8xf32, #tpu.memory_space<vmem>>, vector<4x8xf32>,
      %cst_36 = arith.constant 0.000000e+00 : f32
      %55 = vector.broadcast %cst_36 : f32 to vector<4x8xf32>
      %c0_37 = arith.constant 0 : index
      %c0_38 = arith.constant 0 : index
      %56 = vector.load %arg16[%c0_37, %c0_38] : memref<4x8xf32, #tpu.memory_space<vmem>>, vector<4x8xf32>
      tpu.vector_store %arg16[%c0_37, %c0_38], %55 {strides = array<i32>} : memref<4x8xf32, #tpu.memory_space<vmem>>, vector<4x8xf32>,
      %cst_39 = arith.constant 0.000000e+00 : f32
      %57 = vector.broadcast %cst_39 : f32 to vector<8x128xf32>
      %c0_40 = arith.constant 0 : index
      %c0_41 = arith.constant 0 : index
      %58 = vector.load %arg17[%c0_40, %c0_41] : memref<8x128xf32, #tpu.memory_space<vmem>>, vector<8x128xf32>
      tpu.vector_store %arg17[%c0_40, %c0_41], %57 {strides = array<i32>} : memref<8x128xf32, #tpu.memory_space<vmem>>, vector<8x128xf32>,
    } else {
    }
    %5 = tpu.iota {dimensions = array<i32: 1>} : vector<8x8xi32>
    %c0 = arith.constant 0 : index
    %c0_2 = arith.constant 0 : index
    %6 = vector.load %arg2[%c0, %c0_2] : memref<8x1xi32, #tpu.memory_space<vmem>>, vector<8x1xi32>
    %7 = vector.broadcast %6 : vector<8x1xi32> to vector<8x8xi32>
    %8 = arith.cmpi eq, %5, %7 : vector<8x8xi32>
    %9 = arith.extui %8 : vector<8x8xi1> to vector<8x8xi32>
    %10 = arith.sitofp %9 : vector<8x8xi32> to vector<8x8xf32>
    %11 = arith.truncf %10 : vector<8x8xf32> to vector<8x8xbf16>
    %c0_3 = arith.constant 0 : index
    %c0_4 = arith.constant 0 : index
    %12 = vector.load %arg3[%c0_3, %c0_4] : memref<8x1xi32, #tpu.memory_space<vmem>>, vector<8x1xi32>
    %13 = vector.broadcast %12 : vector<8x1xi32> to vector<8x8xi32>
    %14 = arith.cmpi eq, %5, %13 : vector<8x8xi32>
    %15 = arith.extui %14 : vector<8x8xi1> to vector<8x8xi32>
    %16 = arith.sitofp %15 : vector<8x8xi32> to vector<8x8xf32>
    %17 = arith.truncf %16 : vector<8x8xf32> to vector<8x8xbf16>
    %18 = arith.extui %14 : vector<8x8xi1> to vector<8x8xi32>
    %19 = arith.sitofp %18 : vector<8x8xi32> to vector<8x8xf32>
    %c0_5 = arith.constant 0 : index
    %c0_6 = arith.constant 0 : index
    %20 = vector.load %arg14[%c0_5, %c0_6] : memref<8x384xbf16, #tpu.memory_space<vmem>>, vector<8x128xbf16>
    %cst = arith.constant dense<0.000000e+00> : vector<8x128xf32>
    %21 = tpu.matmul %11, %20, %cst {dimension_numbers = #tpu.dot_dimension_numbers<[1], [0], [0], [1], [0, 0, 1, 1], [], []>} : vector<8x8xbf16>, vector<8x128xbf16>, vector<8x128xf32> -> vector<8x128xf32>
    %c0_7 = arith.constant 0 : index
    %c128 = arith.constant 128 : index
    %22 = vector.load %arg14[%c0_7, %c128] : memref<8x384xbf16, #tpu.memory_space<vmem>>, vector<8x128xbf16>
    %cst_8 = arith.constant dense<0.000000e+00> : vector<8x128xf32>
    %23 = tpu.matmul %17, %22, %cst_8 {dimension_numbers = #tpu.dot_dimension_numbers<[1], [0], [0], [1], [0, 0, 1, 1], [], []>} : vector<8x8xbf16>, vector<8x128xbf16>, vector<8x128xf32> -> vector<8x128xf32>
    %c0_9 = arith.constant 0 : index
    %c0_10 = arith.constant 0 : index
    %24 = vector.load %arg5[%c0_9, %c0_10] : memref<8x16xbf16, #tpu.memory_space<vmem>>, vector<8x16xbf16>
    %c0_11 = arith.constant 0 : index
    %c0_12 = arith.constant 0 : index
    %25 = vector.load %arg7[%c0_11, %c0_12] : memref<16x128xbf16, #tpu.memory_space<vmem>>, vector<16x128xbf16>
    %cst_13 = arith.constant dense<0.000000e+00> : vector<8x128xf32>
    %26 = tpu.matmul %24, %25, %cst_13 {dimension_numbers = #tpu.dot_dimension_numbers<[1], [0], [0], [1], [0, 0, 1, 1], [], []>} : vector<8x16xbf16>, vector<16x128xbf16>, vector<8x128xf32> -> vector<8x128xf32>
    %27 = arith.addf %21, %23 : vector<8x128xf32>
    %28 = arith.addf %27, %26 : vector<8x128xf32>
    %c0_14 = arith.constant 0 : index
    %c0_15 = arith.constant 0 : index
    %29 = vector.load %arg8[%c0_14, %c0_15] : memref<1x128xf32, #tpu.memory_space<vmem>>, vector<1x128xf32>
    %30 = vector.broadcast %29 : vector<1x128xf32> to vector<8x128xf32>
    %31 = arith.addf %28, %30 : vector<8x128xf32>
    %cst_16 = arith.constant 0.00999999977 : f32
    %32 = vector.broadcast %cst_16 : f32 to vector<8x128xf32>
    %33 = arith.mulf %32, %31 : vector<8x128xf32>
    %34 = arith.maximumf %31, %33 : vector<8x128xf32>
    %c0_17 = arith.constant 0 : index
    %c0_18 = arith.constant 0 : index
    %35 = vector.load %arg9[%c0_17, %c0_18] : memref<128x4xf32, #tpu.memory_space<vmem>>, vector<128x4xf32>
    %cst_19 = arith.constant dense<0.000000e+00> : vector<8x4xf32>
    %36 = tpu.matmul %34, %35, %cst_19 {dimension_numbers = #tpu.dot_dimension_numbers<[1], [0], [0], [1], [0, 0, 1, 1], [], []>} : vector<8x128xf32>, vector<128x4xf32>, vector<8x4xf32> -> vector<8x4xf32>
    %c0_i32_20 = arith.constant 0 : i32
    %37 = arith.cmpi eq, %arg0, %c0_i32_20 : i32
    %38 = arith.extui %37 : i1 to i32
    %c0_i32_21 = arith.constant 0 : i32
    %39 = arith.cmpi ne, %38, %c0_i32_21 : i32
    scf.if %39 {
      %48 = vector.extract_strided_slice %36 {offsets = [0, 0], sizes = [8, 1], strides = [1, 1]} : vector<8x4xf32> to vector<8x1xf32>
      %cst_26 = arith.constant -1.000000e+30 : f32
      %49 = vector.shape_cast %48 : vector<8x1xf32> to vector<8x1xf32>
      %50 = vector.broadcast %49 : vector<8x1xf32> to vector<8x8xf32>
      %51 = vector.broadcast %cst_26 : f32 to vector<8x8xf32>
      %52 = arith.select %14, %50, %51 : vector<8x8xi1>, vector<8x8xf32>
      %cst_27 = arith.constant dense<0xFF800000> : vector<8xf32>
      %53 = vector.multi_reduction <maximumf>, %52, %cst_27 [0] : vector<8x8xf32> to vector<8xf32>
      %54 = vector.shape_cast %53 : vector<8xf32> to vector<1x8xf32>
      %55 = vector.extract_strided_slice %36 {offsets = [0, 1], sizes = [8, 1], strides = [1, 1]} : vector<8x4xf32> to vector<8x1xf32>
      %cst_28 = arith.constant -1.000000e+30 : f32
      %56 = vector.shape_cast %55 : vector<8x1xf32> to vector<8x1xf32>
      %57 = vector.broadcast %56 : vector<8x1xf32> to vector<8x8xf32>
      %58 = vector.broadcast %cst_28 : f32 to vector<8x8xf32>
      %59 = arith.select %14, %57, %58 : vector<8x8xi1>, vector<8x8xf32>
      %cst_29 = arith.constant dense<0xFF800000> : vector<8xf32>
      %60 = vector.multi_reduction <maximumf>, %59, %cst_29 [0] : vector<8x8xf32> to vector<8xf32>
      %61 = vector.shape_cast %60 : vector<8xf32> to vector<1x8xf32>
      %62 = vector.extract_strided_slice %36 {offsets = [0, 2], sizes = [8, 1], strides = [1, 1]} : vector<8x4xf32> to vector<8x1xf32>
      %cst_30 = arith.constant -1.000000e+30 : f32
      %63 = vector.shape_cast %62 : vector<8x1xf32> to vector<8x1xf32>
      %64 = vector.broadcast %63 : vector<8x1xf32> to vector<8x8xf32>
      %65 = vector.broadcast %cst_30 : f32 to vector<8x8xf32>
      %66 = arith.select %14, %64, %65 : vector<8x8xi1>, vector<8x8xf32>
      %cst_31 = arith.constant dense<0xFF800000> : vector<8xf32>
      %67 = vector.multi_reduction <maximumf>, %66, %cst_31 [0] : vector<8x8xf32> to vector<8xf32>
      %68 = vector.shape_cast %67 : vector<8xf32> to vector<1x8xf32>
      %69 = vector.extract_strided_slice %36 {offsets = [0, 3], sizes = [8, 1], strides = [1, 1]} : vector<8x4xf32> to vector<8x1xf32>
      %cst_32 = arith.constant -1.000000e+30 : f32
      %70 = vector.shape_cast %69 : vector<8x1xf32> to vector<8x1xf32>
      %71 = vector.broadcast %70 : vector<8x1xf32> to vector<8x8xf32>
      %72 = vector.broadcast %cst_32 : f32 to vector<8x8xf32>
      %73 = arith.select %14, %71, %72 : vector<8x8xi1>, vector<8x8xf32>
      %cst_33 = arith.constant dense<0xFF800000> : vector<8xf32>
      %74 = vector.multi_reduction <maximumf>, %73, %cst_33 [0] : vector<8x8xf32> to vector<8xf32>
      %75 = vector.shape_cast %74 : vector<8xf32> to vector<1x8xf32>
      %76 = tpu.concatenate %54, %61, %68, %75 in 0 : vector<1x8xf32>, vector<1x8xf32>, vector<1x8xf32>, vector<1x8xf32> -> vector<4x8xf32>
      %c0_34 = arith.constant 0 : index
      %c0_35 = arith.constant 0 : index
      %77 = vector.load %arg15[%c0_34, %c0_35] : memref<4x8xf32, #tpu.memory_space<vmem>>, vector<4x8xf32>
      %78 = arith.maximumf %77, %76 : vector<4x8xf32>
      %79 = arith.subf %77, %78 : vector<4x8xf32>
      %80 = math.exp %79 : vector<4x8xf32>
      %cst_36 = arith.constant dense<0.000000e+00> : vector<8x4xf32>
      %81 = tpu.matmul %19, %78, %cst_36 {dimension_numbers = #tpu.dot_dimension_numbers<[1], [1], [0], [0], [0, 0, 1, 0], [], []>} : vector<8x8xf32>, vector<4x8xf32>, vector<8x4xf32> -> vector<8x4xf32>
      %82 = arith.subf %36, %81 : vector<8x4xf32>
      %83 = math.exp %82 : vector<8x4xf32>
      %cst_37 = arith.constant dense<0.000000e+00> : vector<4x8xf32>
      %84 = tpu.matmul %83, %19, %cst_37 {dimension_numbers = #tpu.dot_dimension_numbers<[0], [0], [1], [1], [0, 1, 1, 1], [], []>} : vector<8x4xf32>, vector<8x8xf32>, vector<4x8xf32> -> vector<4x8xf32>
      %c0_38 = arith.constant 0 : index
      %c0_39 = arith.constant 0 : index
      %85 = vector.load %arg16[%c0_38, %c0_39] : memref<4x8xf32, #tpu.memory_space<vmem>>, vector<4x8xf32>
      %86 = arith.mulf %80, %85 : vector<4x8xf32>
      %87 = arith.addf %86, %84 : vector<4x8xf32>
      %c0_40 = arith.constant 0 : index
      %c0_41 = arith.constant 0 : index
      %88 = vector.load %arg16[%c0_40, %c0_41] : memref<4x8xf32, #tpu.memory_space<vmem>>, vector<4x8xf32>
      tpu.vector_store %arg16[%c0_40, %c0_41], %87 {strides = array<i32>} : memref<4x8xf32, #tpu.memory_space<vmem>>, vector<4x8xf32>,
      %c0_42 = arith.constant 0 : index
      %c0_43 = arith.constant 0 : index
      %89 = vector.load %arg15[%c0_42, %c0_43] : memref<4x8xf32, #tpu.memory_space<vmem>>, vector<4x8xf32>
      tpu.vector_store %arg15[%c0_42, %c0_43], %78 {strides = array<i32>} : memref<4x8xf32, #tpu.memory_space<vmem>>, vector<4x8xf32>,
    } else {
    }
    %c1_i32 = arith.constant 1 : i32
    %40 = arith.cmpi eq, %arg0, %c1_i32 : i32
    %41 = arith.extui %40 : i1 to i32
    %c0_i32_22 = arith.constant 0 : i32
    %42 = arith.cmpi ne, %41, %c0_i32_22 : i32
    scf.if %42 {
      %c0_26 = arith.constant 0 : index
      %c0_27 = arith.constant 0 : index
      %48 = vector.load %arg12[%c0_26, %c0_27] : memref<8x128xf32, #tpu.memory_space<vmem>>, vector<8x128xf32>
      tpu.vector_store %arg12[%c0_26, %c0_27], %34 {strides = array<i32>} : memref<8x128xf32, #tpu.memory_space<vmem>>, vector<8x128xf32>,
      %c0_28 = arith.constant 0 : index
      %c0_29 = arith.constant 0 : index
      %49 = vector.load %arg16[%c0_28, %c0_29] : memref<4x8xf32, #tpu.memory_space<vmem>>, vector<4x8xf32>
      %cst_30 = arith.constant 1.000000e-30 : f32
      %50 = vector.broadcast %cst_30 : f32 to vector<4x8xf32>
      %51 = arith.maximumf %49, %50 : vector<4x8xf32>
      %52 = tpu.reciprocal %51 {approx = true} : vector<4x8xf32> -> vector<4x8xf32>
      %53 = arith.mulf %51, %52 : vector<4x8xf32>
      %cst_31 = arith.constant 2.000000e+00 : f32
      %54 = vector.broadcast %cst_31 : f32 to vector<4x8xf32>
      %55 = arith.subf %54, %53 : vector<4x8xf32>
      %56 = arith.mulf %52, %55 : vector<4x8xf32>
      %c0_32 = arith.constant 0 : index
      %c0_33 = arith.constant 0 : index
      %57 = vector.load %arg15[%c0_32, %c0_33] : memref<4x8xf32, #tpu.memory_space<vmem>>, vector<4x8xf32>
      %cst_34 = arith.constant dense<0.000000e+00> : vector<8x4xf32>
      %58 = tpu.matmul %19, %57, %cst_34 {dimension_numbers = #tpu.dot_dimension_numbers<[1], [1], [0], [0], [0, 0, 1, 0], [], []>} : vector<8x8xf32>, vector<4x8xf32>, vector<8x4xf32> -> vector<8x4xf32>
      %cst_35 = arith.constant dense<0.000000e+00> : vector<8x4xf32>
      %59 = tpu.matmul %19, %56, %cst_35 {dimension_numbers = #tpu.dot_dimension_numbers<[1], [1], [0], [0], [0, 0, 1, 0], [], []>} : vector<8x8xf32>, vector<4x8xf32>, vector<8x4xf32> -> vector<8x4xf32>
      %60 = arith.subf %36, %58 : vector<8x4xf32>
      %61 = math.exp %60 : vector<8x4xf32>
      %62 = arith.mulf %61, %59 : vector<8x4xf32>
      %cst_36 = arith.constant 0.000000e+00 : f32
      %63 = vector.broadcast %cst_36 : f32 to vector<8x124xf32>
      %64 = tpu.concatenate %62, %63 in 1 : vector<8x4xf32>, vector<8x124xf32> -> vector<8x128xf32>
      %c0_37 = arith.constant 0 : index
      %c0_38 = arith.constant 0 : index
      %65 = vector.load %arg13[%c0_37, %c0_38] : memref<8x128xf32, #tpu.memory_space<vmem>>, vector<8x128xf32>
      tpu.vector_store %arg13[%c0_37, %c0_38], %64 {strides = array<i32>} : memref<8x128xf32, #tpu.memory_space<vmem>>, vector<8x128xf32>,
      %c0_39 = arith.constant 0 : index
      %c256 = arith.constant 256 : index
      %66 = vector.load %arg14[%c0_39, %c256] : memref<8x384xbf16, #tpu.memory_space<vmem>>, vector<8x128xbf16>
      %cst_40 = arith.constant dense<0.000000e+00> : vector<8x128xf32>
      %67 = tpu.matmul %11, %66, %cst_40 {dimension_numbers = #tpu.dot_dimension_numbers<[1], [0], [0], [1], [0, 0, 1, 1], [], []>} : vector<8x8xbf16>, vector<8x128xbf16>, vector<8x128xf32> -> vector<8x128xf32>
      %c0_41 = arith.constant 0 : index
      %c0_42 = arith.constant 0 : index
      %68 = vector.load %arg10[%c0_41, %c0_42] : memref<4x128xf32, #tpu.memory_space<vmem>>, vector<4x128xf32>
      %cst_43 = arith.constant dense<0.000000e+00> : vector<8x128xf32>
      %69 = tpu.matmul %62, %68, %cst_43 {dimension_numbers = #tpu.dot_dimension_numbers<[1], [0], [0], [1], [0, 0, 1, 1], [], []>} : vector<8x4xf32>, vector<4x128xf32>, vector<8x128xf32> -> vector<8x128xf32>
      %70 = arith.mulf %67, %69 : vector<8x128xf32>
      %71 = arith.truncf %70 : vector<8x128xf32> to vector<8x128xbf16>
      %c0_44 = arith.constant 0 : index
      %c0_45 = arith.constant 0 : index
      %72 = vector.load %arg17[%c0_44, %c0_45] : memref<8x128xf32, #tpu.memory_space<vmem>>, vector<8x128xf32>
      %cst_46 = arith.constant dense<0.000000e+00> : vector<8x128xf32>
      %73 = tpu.matmul %17, %71, %cst_46 {dimension_numbers = #tpu.dot_dimension_numbers<[0], [0], [1], [1], [0, 1, 1, 1], [], []>} : vector<8x8xbf16>, vector<8x128xbf16>, vector<8x128xf32> -> vector<8x128xf32>
      %74 = arith.addf %72, %73 : vector<8x128xf32>
      %c0_47 = arith.constant 0 : index
      %c0_48 = arith.constant 0 : index
      %75 = vector.load %arg17[%c0_47, %c0_48] : memref<8x128xf32, #tpu.memory_space<vmem>>, vector<8x128xf32>
      tpu.vector_store %arg17[%c0_47, %c0_48], %74 {strides = array<i32>} : memref<8x128xf32, #tpu.memory_space<vmem>>, vector<8x128xf32>,
    } else {
    }
    %c1_i32_23 = arith.constant 1 : i32
    %43 = arith.cmpi eq, %arg0, %c1_i32_23 : i32
    %c1_i32_24 = arith.constant 1 : i32
    %44 = arith.cmpi eq, %arg1, %c1_i32_24 : i32
    %45 = arith.andi %43, %44 : i1
    %46 = arith.extui %45 : i1 to i32
    %c0_i32_25 = arith.constant 0 : i32
    %47 = arith.cmpi ne, %46, %c0_i32_25 : i32
    scf.if %47 {
      %c0_26 = arith.constant 0 : index
      %c0_27 = arith.constant 0 : index
      %48 = vector.load %arg17[%c0_26, %c0_27] : memref<8x128xf32, #tpu.memory_space<vmem>>, vector<8x128xf32>
      %c0_28 = arith.constant 0 : index
      %c0_29 = arith.constant 0 : index
      %49 = vector.load %arg11[%c0_28, %c0_29] : memref<8x128xf32, #tpu.memory_space<vmem>>, vector<8x128xf32>
      tpu.vector_store %arg11[%c0_28, %c0_29], %48 {strides = array<i32>} : memref<8x128xf32, #tpu.memory_space<vmem>>, vector<8x128xf32>,
    } else {
    }
    return
  }
  func.func @transform_0(%arg0: i32, %arg1: i32) -> (i32, i32) {
    %c0_i32 = arith.constant 0 : i32
    %c0_i32_0 = arith.constant 0 : i32
    return %arg1, %c0_i32 : i32, i32
  }
  func.func @transform_1(%arg0: i32, %arg1: i32) -> (i32, i32) {
    %c0_i32 = arith.constant 0 : i32
    %c0_i32_0 = arith.constant 0 : i32
    return %arg1, %c0_i32 : i32, i32
  }
  func.func @transform_2(%arg0: i32, %arg1: i32) -> (i32, i32) {
    %c0_i32 = arith.constant 0 : i32
    %c0_i32_0 = arith.constant 0 : i32
    %c0_i32_1 = arith.constant 0 : i32
    return %c0_i32, %c0_i32_0 : i32, i32
  }
  func.func @transform_3(%arg0: i32, %arg1: i32) -> (i32, i32) {
    %c0_i32 = arith.constant 0 : i32
    %c0_i32_0 = arith.constant 0 : i32
    return %arg1, %c0_i32 : i32, i32
  }
  func.func @transform_4(%arg0: i32, %arg1: i32) -> (i32, i32) {
    %c0_i32 = arith.constant 0 : i32
    %c0_i32_0 = arith.constant 0 : i32
    %c0_i32_1 = arith.constant 0 : i32
    return %c0_i32, %c0_i32_0 : i32, i32
  }
  func.func @transform_5(%arg0: i32, %arg1: i32) -> (i32, i32) {
    %c0_i32 = arith.constant 0 : i32
    %c0_i32_0 = arith.constant 0 : i32
    %c0_i32_1 = arith.constant 0 : i32
    return %c0_i32, %c0_i32_0 : i32, i32
  }
  func.func @transform_6(%arg0: i32, %arg1: i32) -> (i32, i32) {
    %c0_i32 = arith.constant 0 : i32
    %c0_i32_0 = arith.constant 0 : i32
    %c0_i32_1 = arith.constant 0 : i32
    return %c0_i32, %c0_i32_0 : i32, i32
  }
  func.func @transform_7(%arg0: i32, %arg1: i32) -> (i32, i32) {
    %c0_i32 = arith.constant 0 : i32
    %c0_i32_0 = arith.constant 0 : i32
    %c0_i32_1 = arith.constant 0 : i32
    return %c0_i32, %c0_i32_0 : i32, i32
  }
  func.func @transform_8(%arg0: i32, %arg1: i32) -> (i32, i32) {
    %c0_i32 = arith.constant 0 : i32
    %c0_i32_0 = arith.constant 0 : i32
    %c0_i32_1 = arith.constant 0 : i32
    return %c0_i32, %c0_i32_0 : i32, i32
  }
  func.func @transform_9(%arg0: i32, %arg1: i32) -> (i32, i32) {
    %c0_i32 = arith.constant 0 : i32
    %c0_i32_0 = arith.constant 0 : i32
    %c0_i32_1 = arith.constant 0 : i32
    return %c0_i32, %c0_i32_0 : i32, i32
  }
  func.func @transform_10(%arg0: i32, %arg1: i32) -> (i32, i32) {
    %0 = arith.muli %arg0, %arg1 : i32
    %c0_i32 = arith.constant 0 : i32
    %c0_i32_0 = arith.constant 0 : i32
    return %0, %c0_i32 : i32, i32
  }
  func.func @transform_11(%arg0: i32, %arg1: i32) -> (i32, i32) {
    %0 = arith.muli %arg0, %arg1 : i32
    %c0_i32 = arith.constant 0 : i32
    %c0_i32_0 = arith.constant 0 : i32
    return %0, %c0_i32 : i32, i32
  }
}

</mosaic_0001>

<bundles_post_ra>
// kernel: tpu_custom_call.1
= control target key start
LH: loop header
LB: loop body
LE: loop exit
PB: predicated region body
PF: predicated region fallthrough
CT: control target
= control target key end

     0   :  { %s2585_s0 = inlined_call_operand.vmem [shape: s32[16,1], index: 0, kind: input, shape index: {}]   ;;  %s2586_s1 = inlined_call_operand.vmem [shape: s32[16,1], index: 1, kind: input, shape index: {}]   ;;  %s2587_s2 = inlined_call_operand.vmem [shape: bf16[8,32], index: 2, kind: input, shape index: {}]   ;;  %s2588_s3 = inlined_call_operand.vmem [shape: bf16[16,16], index: 3, kind: input, shape index: {}]   ;;  %s2589_s4 = inlined_call_operand.vmem [shape: bf16[32,384], index: 4, kind: input, shape index: {}]   ;;  %s2590_s5 = inlined_call_operand.vmem [shape: bf16[16,128], index: 5, kind: input, shape index: {}]   ;;  %s2591_s6 = inlined_call_operand.vmem [shape: f32[1,128], index: 6, kind: input, shape index: {}]   ;;  %s2592_s7 = inlined_call_operand.vmem [shape: f32[128,4], index: 7, kind: input, shape index: {}]   ;;  %s2593_s8 = inlined_call_operand.vmem [shape: f32[4,128], index: 8, kind: input, shape index: {}]   ;;  %s2594_s9 = inlined_call_operand.hbm [shape: f32[8,128], index: 9, kind: output, shape index: {0}]   ;;  %s2595_s10 = inlined_call_operand.hbm [shape: f32[16,128], index: 10, kind: output, shape index: {1}]   ;;  %s2596_s11 = inlined_call_operand.hbm [shape: f32[16,128], index: 11, kind: output, shape index: {2}]  }
   0x1   :  { %2606 = sst [smem:[#allocation21_spill]] %s2594_s9 }
   0x2   :  { %17 = vsyncpa [#allocation7], 0 }
   0x3   :  { %18 = vsyncpa [#allocation9], 0 }
   0x4   :  { %20 = vsyncpa [#allocation9 + $0x1], 0  ;;  %s2192_s17 = smov 0   ;;  %s2194_s18 = smov 0  }
   0x5   :  { %s2196_s19 = smov 0   ;;  %s2198_s20 = smov 0  }
   0x6   :  { %s2200_s21 = smov 0   ;;  %s2202_s22 = smov 0  }
   0x7   :  { %s2204_s23 = smov 0   ;;  %s2206_s24 = smov 0  }
   0x8 LB: > { %2607 = sst [smem:[#allocation13_spill]] %s2087_s18  ;;  %s2598_s25 = sadd.s32 4294967295, %s2111_s24   ;;  %s2111_s24 = sphi %s2206_s24, %s26_s24   ;;  %s2107_s23 = sphi %s2204_s23, %s2631_s23   ;;  %s2103_s22 = sphi %s2202_s22, %s2630_s22   ;;  %s2099_s21 = sphi %s2200_s21, %s2629_s21   ;;  %s2095_s20 = sphi %s2198_s20, %s2628_s20   ;;  %s2091_s19 = sphi %s2196_s19, %s2627_s19   ;;  %s2087_s18 = sphi %s2194_s18, %s2626_s18   ;;  %s2083_s17 = sphi %s2192_s17, %s2625_s17  }
   0x9   : > { %2608 = sst [smem:[#allocation14_spill]] %s2091_s19  ;;  %s2597_s26 = sadd.s32 4294967294, %s2111_s24  }
   0xa   : > { %2609 = sst [smem:[#allocation15_spill]] %s2103_s22  ;;  %s35_s27 = sadd.s32 1, %s2103_s22 }
   0xb   : > { %2610 = sst [smem:[#allocation16_spill]] %s2107_s23  ;;  %p36_p0 = scmp.ge.s32.totalorder %s35_s27, 2 }
   0xc   : > { %s38_s28 = sadd.s32 1, %s2107_s23  ;;  %s267_s29 = smul.u32 %s2103_s22, %s2107_s23 }
   0xd   : > { %p282_p1 = scmp.ne.s32.totalorder %s2091_s19, %s2087_s18  ;;  %s2633_s27 = smov (%p36_p0, %s35_s27), 0 }
   0xe   : > { %2611 = sst [smem:[#allocation17_spill]] %s2633_s27  ;;  %s2635_s28 = smov (!%p36_p0, %s38_s28), %s2107_s23 }
   0xf   : > { %p2243_p2 = scmp.eq.s32.totalorder %s2598_s25, 3  ;;  %p288_p3 = scmp.ne.s32.totalorder %s2087_s18, %s2083_s17 }
  0x10   : > { %p40_p4 = scmp.ge.s32.totalorder %s2635_s28, 2  ;;  %p289_p5 = scmp.eq.s32.totalorder %s2597_s26, 3 }
  0x11   : > { %p2252_p6 = por %p2243_p2, %p282_p1  ;;  %p1657_p7 = scmp.ge.s32.totalorder %s2111_s24, 1 }
  0x12   : > { %s2637_s28 = smov (%p40_p4, %s2635_s28), 0  ;;  %p2259_p8 = por %p289_p5, %p288_p3 }
  0x13   : > { %2614 = sst [smem:[#allocation18_spill]] %s2637_s28  ;;  %p374_p9 = scmp.lt.s32.totalorder %s2111_s24, 5 }
  0x14   : > { %s2615_s13 = scalar_select %p2259_p8, 1, 0 }
  0x15   : > { %s268_s14 = smul.u32 %s2637_s28, %s2633_s27  ;;  %p375_p10 = pnand %p1657_p7, %p374_p9 }
  0x16   : > { %2616 = sst [smem:[#allocation19_spill]] %s2615_s13  ;;  %s272_s16 = sadd.s32 1, %s2091_s19 }
  0x17   : > { %s269_s15 = ssub.s32 %s267_s29, %s268_s14  ;;  %s416_s26 = sand.u32 (!%p375_p10), 1, %s2087_s18  }
  0x18   : > { %p270_p11 = scmp.eq.s32.totalorder %s269_s15, 0  ;;  %378 = sbr.rel (%p375_p10) target bundleno = 2177 (0x881), region = 56 }
  0x19   : > { %p426_p12 = scmp.lt.s32.totalorder (!%p375_p10), %s2095_s20, 1  ;;  %s2272_s25 = sshll.u32 (!%p375_p10), %s416_s26, 3 }
  0x1a   : > { %s2268_s17 = scalar_select %p270_p11, %s2091_s19, %s272_s16  }
  0x1b   : > { %p441_p13 = scmp.eq.s32.totalorder (!%p375_p10), %s2099_s21, 0  ;;  %p442_p0 = scmp.eq.s32.totalorder (!%p375_p10), %s2095_s20, 0 }
  0x1c   : > { %2617 = sst [smem:[#allocation20_spill]] %s2268_s17  ;;  %s418_s13 = scalar_lea.vmem (!%p375_p10), [#allocation8], %s2272_s25 }
  0x1d   : > { %s427_s28 = scalar_select %p426_p12, %s2095_s20, 1 }
  0x1e   : > { %p443_p1 = pnand %p442_p0, %p441_p13  ;;  %s425_s9 = scalar_lea.vmem [#allocation10], %s2272_s25 }
  0x1f   : > { %s1660_s29 = sshll.u32 %s427_s28, 3  ;;  %s1662_s14 = sshll.u32 %s427_s28, 2 }
  0x20   : > { %s2280_s27 = scalar_lea.vmem %s2585_s0, %s1660_s29  ;;  %s2285_s17 = scalar_lea.vmem %s2586_s1, %s1660_s29 }
  0x21   : > { %s2290_s18 = scalar_lea.vmem %s2588_s3, %s1662_s14  ;;  %446 = sbr.rel (%p443_p1) target bundleno = 247 (0xf7), region = 60 }
  0x26   : > { %vm588_vm0 = vcmask 60416   ;;  %v2113_v0 = vmov 0.0   ;;  %v2114_v1 = vmov -1e+30   ;;  %v1942_v2 = vld [vmem:[%s2589_s4 + $0x1c] ss:$12 sps:$4 sm:$0xff]  }
  0x27   : > { %1744 = vmatprep.subr.bf16.mxu1 %v2113_v0  ;;  %589 = vst.msk [vmem:[#allocation3] sm:$0xf] %vm588_vm0, %v2114_v1  ;;  %590 = vst.msk [vmem:[#allocation4] sm:$0xf] %vm588_vm0, %v2113_v0  ;;  %v1944_v3 = vld [vmem:[%s2589_s4 + $0x20] ss:$12 sps:$4 sm:$0xff]   ;;  %504 = vmatprep.subr.bf16.mxu0 %v1942_v2 }
  0x28   : > { %591 = vst [vmem:[#allocation5] sm:$0xff] %v2113_v0  ;;  %v1945_v4 = vld [vmem:[%s2589_s4 + $0x18] ss:$12 sps:$4 sm:$0xff]   ;;  %vm2115_vm1 = vmmov 0   ;;  %1745 = vmatpush3.bf16.msra.mxu1 %v1944_v3  ;;  %v1948_v6 = vld [vmem:[%s2589_s4 + $0x8] ss:$12 sps:$4 sm:$0xff]  }
  0x29   : > { %v1946_v5 = vld [vmem:[%s2589_s4 + $0x4] ss:$12 sps:$4 sm:$0xff]   ;;  %1748 = vmatprep.mubr.msk.bf16.mxu1 %vm2115_vm1, %v2113_v0  ;;  %505 = vmatpush1.bf16.msra.mxu0 %v1945_v4  ;;  %v1949_v7 = vld [vmem:[%s2589_s4] ss:$12 sps:$4 sm:$0xff]   ;;  %v2116_v8 = vmov 0   ;;  %vm488_vm2 = vcmask 261120  }
  0x2a   : > { %1746 = vmatprep.subr.bf16.mxu1 %v2113_v0  ;;  %506 = vmatprep.subr.bf16.mxu0 %v1946_v5  ;;  %v447_v9 = vld [vmem:[%s2587_s2] sm:$0xf] }
  0x2b   : > { %524 = vmatprep.mubr.bf16.mxu0 %v2116_v8 }
  0x2c   : > { %1747 = vmatpush3.bf16.msra.mxu1 %v1948_v6 }
  0x2d   : > { %507 = vmatpush1.bf16.msra.mxu0 %v1949_v7 }
  0x2f   : > { %1749 = vmatmul.mubr.msk.bf16.vlgmr.msra.gmra.mxu1 %vm488_vm2, %v447_v9 }
  0x30   : > { %1669 = vmatmul.mubr.msk.bf16.vlgmr.msra.gmra.mxu0 %vm488_vm2, %v447_v9 }
  0xef   : > { %v567_v10 = vpop.f32.mrf.mxu1 }
  0xf0   : > { %v526_v11 = vpop.f32.mrf.mxu0  ;;  %v1703_v12 = vpack.c.bf16 %v567_v10, %v567_v10 }
  0xf1   : > { %v1750_v13 = vpop.f32.mrf.mxu1 }
  0xf2   : > { %v528_v14 = vpop.f32.mrf.mxu0  ;;  %587 = vst [vmem:[#allocation2 + $0x8] sm:$0xf] %v1703_v12 }
  0xf3   : > { %v1702_v15 = vpack.c.bf16 %v528_v14, %v526_v11  ;;  %v570_v16 = vpop.f32.mrf.mxu1 }
  0xf4   : > { %v530_v17 = vpop.f32.mrf.mxu0 }
  0xf5   : > { %586 = vst [vmem:[#allocation2] sm:$0xff] %v1702_v15  ;;  %v1751_v18 = vpop.f32.mrf.mxu1 }
  0xf6   : > { %v531_v19 = vpop.f32.mrf.mxu0 }
  0xf7 PF: > { %v602_v20 = vld [vmem:[%s2285_s17] sm:$0xff]  ;;  %v2117_v21 = vmov 0   ;;  %v2118_v22 = vmov 0.0   ;;  %vm616_vm3 = vcmask 1043456   ;;  %vm2119_vm4 = vmmov 0   ;;  %v785_v26 = vld [vmem:[%s2592_s7 + $0x78] sm:$0xff] }
  0xf8   : > { %1950 = vset.pattern.permute.xlu0 %v2117_v21  ;;  %1752 = vmatprep.subr.bf16.mxu0 %v2118_v22  ;;  %v594_v25 = vld [vmem:[%s2280_s27] sm:$0xff]  ;;  %v784_v27 = vld [vmem:[%s2592_s7 + $0x70] sm:$0xff]  ;;  %v592_v28 = vlaneseq  ;;  %vm612_vm6 = vcmask 64512   ;;  %vm669_vm7 = vcmask 130048   ;;  %v783_v41 = vld [vmem:[%s2592_s7 + $0x68] sm:$0xff]  ;;  %p1680_p3 = scmp.ne.s32.totalorder %s2099_s21, 0 }
  0xf9   : > { %604 = vperm.xlu0 %1950, %v602_v20   ;;  %1754 = vmatprep.mubr.msk.bf16.mxu0 %vm2119_vm4, %v2118_v22  ;;  %v1951_v33 = vld [vmem:[%s2590_s5] sm:$0xff]   ;;  %v781_v43 = vld [vmem:[%s2592_s7 + $0x58] sm:$0xff]  ;;  %v780_v44 = vld [vmem:[%s2592_s7 + $0x50] sm:$0xff] }
  0xfa   : > { %1770 = vmatprep.subr.mxu1 %v2118_v22  ;;  %1802 = vmatprep.mubr.msk.f32.mxu1 %vm2119_vm4, %v2118_v22  ;;  %v593_v29 = vand.u32 127, %v592_v28  ;;  %v660_v37 = vld [vmem:[%s2290_s18] sm:$0xf]  ;;  %v779_v45 = vld [vmem:[%s2592_s7 + $0x48] sm:$0xff]  ;;  %v777_v47 = vld [vmem:[%s2592_s7 + $0x38] sm:$0xff] }
  0xfb   : > { %1771 = vmatpush3.msra.mxu1 %v785_v26  ;;  %v782_v42 = vld [vmem:[%s2592_s7 + $0x60] sm:$0xff]  ;;  %v776_v48 = vld [vmem:[%s2592_s7 + $0x30] sm:$0xff]  ;;  %v775_v49 = vld [vmem:[%s2592_s7 + $0x28] sm:$0xff] }
  0xfc   : > { %v611_v23 = vld [vmem:[#allocation2 + $0x4] sm:$0xf]  ;;  %1772 = vmatprep.subr.mxu1 %v2118_v22  ;;  %v610_v35 = vld [vmem:[#allocation2] sm:$0xf]  ;;  %v773_v51 = vld [vmem:[%s2592_s7 + $0x18] sm:$0xff] }
  0xfd   : > { %v618_v24 = vsel %vm616_vm3, %v611_v23, 0  ;;  %596 = vperm.xlu0 %1950, %v594_v25   ;;  %1773 = vmatpush3.msra.mxu1 %v784_v27  ;;  %v717_v38 = vsel %vm616_vm3, %v610_v35, 0  ;;  %v778_v46 = vld [vmem:[%s2592_s7 + $0x40] sm:$0xff]  ;;  %v772_v52 = vld [vmem:[%s2592_s7 + $0x10] sm:$0xff]  ;;  %v771_v53 = vld [vmem:[%s2592_s7 + $0x8] sm:$0xff] }
  0xfe   : > { %1753 = vmatpush3.bf16.msra.mxu0 %v618_v24  ;;  %1774 = vmatprep.subr.mxu1 %v2118_v22  ;;  %v774_v50 = vld [vmem:[%s2592_s7 + $0x20] sm:$0xff] }
  0xff   : > { %1758 = vmatprep.subr.bf16.mxu0 %v2118_v22  ;;  %1775 = vmatpush3.msra.mxu1 %v783_v41  ;;  %v770_v54 = vld [vmem:[%s2592_s7] sm:$0xff] }
 0x100   : > { %1776 = vmatprep.subr.mxu1 %v2118_v22  ;;  %v1679_v1 = vld [vmem:[%s2591_s6] ss:$0 sm:$0xff] }
 0x101   : > { %1777 = vmatpush3.msra.mxu1 %v782_v42 }
 0x102   : > { %1778 = vmatprep.subr.mxu1 %v2118_v22 }
 0x103   : > { %1779 = vmatpush3.msra.mxu1 %v781_v43 }
 0x104   : > { %1780 = vmatprep.subr.mxu1 %v2118_v22 }
 0x105   : > { %1781 = vmatpush3.msra.mxu1 %v780_v44 }
 0x106   : > { %1782 = vmatprep.subr.mxu1 %v2118_v22 }
 0x107   : > { %1783 = vmatpush3.msra.mxu1 %v779_v45 }
 0x108   : > { %1784 = vmatprep.subr.mxu1 %v2118_v22 }
 0x109   : > { %1785 = vmatpush3.msra.mxu1 %v778_v46 }
 0x10a   : > { %1786 = vmatprep.subr.mxu1 %v2118_v22 }
 0x10b   : > { %1787 = vmatpush3.msra.mxu1 %v777_v47 }
 0x10c   : > { %1788 = vmatprep.subr.mxu1 %v2118_v22 }
 0x10d   : > { %1789 = vmatpush3.msra.mxu1 %v776_v48 }
 0x10e   : > { %1790 = vmatprep.subr.mxu1 %v2118_v22 }
 0x10f   : > { %1791 = vmatpush3.msra.mxu1 %v775_v49 }
 0x110   : > { %1792 = vmatprep.subr.mxu1 %v2118_v22 }
 0x111   : > { %1793 = vmatpush3.msra.mxu1 %v774_v50 }
 0x112   : > { %1794 = vmatprep.subr.mxu1 %v2118_v22 }
 0x113   : > { %1795 = vmatpush3.msra.mxu1 %v773_v51 }
 0x114   : > { %1796 = vmatprep.subr.mxu1 %v2118_v22 }
 0x115   : > { %1797 = vmatpush3.msra.mxu1 %v772_v52 }
 0x116   : > { %1798 = vmatprep.subr.mxu1 %v2118_v22 }
 0x117   : > { %1799 = vmatpush3.msra.mxu1 %v771_v53 }
 0x118   : > { %1800 = vmatprep.subr.mxu1 %v2118_v22 }
 0x119   : > { %1801 = vmatpush3.msra.mxu1 %v770_v54 }
 0x174   : > { %v605_v30 = vpop.permute.xlu0 %604 }
 0x175   : > { %vm2333_vm5 = vcmp.eq.s32.totalorder %v593_v29, %v605_v30 }
 0x176   : > { %v2340_v32 = vsel %vm2333_vm5, 1.0, %v2118_v22 }
 0x177   : > { %v2347_v34 = vpack.c.bf16 %v2340_v32, %v2340_v32 }
 0x178   : > { %v597_v36 = vpop.permute.xlu0 %596 }
 0x179   : > { %1755 = vmatmul.mubr.msk.bf16.vlgmr.msra.gmra.mxu0 %vm612_vm6, %v2347_v34  ;;  %vm598_vm8 = vcmp.eq.s32.totalorder %v593_v29, %v597_v36 }
 0x17a   : > { %1759 = vmatpush3.bf16.msra.mxu0 %v1951_v33  ;;  %1760 = vmatprep.mubr.msk.bf16.mxu0 %vm2119_vm4, %v2118_v22  ;;  %v1673_v39 = vsel %vm598_vm8, 1.0, %v2118_v22 }
 0x17b   : > { %1764 = vmatprep.subr.bf16.mxu0 %v2118_v22  ;;  %v2359_v40 = vpack.c.bf16 %v1673_v39, %v1673_v39 }
 0x181   : > { %1761 = vmatmul.mubr.msk.bf16.vlgmr.msra.gmra.mxu0 %vm669_vm7, %v660_v37 }
 0x182   : > { %1765 = vmatpush3.bf16.msra.mxu0 %v717_v38  ;;  %1766 = vmatprep.mubr.msk.bf16.mxu0 %vm2119_vm4, %v2118_v22 }
 0x189   : > { %1767 = vmatmul.mubr.msk.bf16.vlgmr.msra.gmra.mxu0 %vm612_vm6, %v2359_v40 }
 0x239   : > { %v654_v55 = vpop.f32.mrf.mxu0 }
 0x23b   : > { %v1756_v56 = vpop.f32.mrf.mxu0 }
 0x23d   : > { %v657_v57 = vpop.f32.mrf.mxu0 }
 0x23f   : > { %v1757_v58 = vpop.f32.mrf.mxu0 }
 0x241   : > { %v707_v59 = vpop.f32.mrf.mxu0 }
 0x243   : > { %v1762_v60 = vpop.f32.mrf.mxu0 }
 0x245   : > { %v710_v61 = vpop.f32.mrf.mxu0 }
 0x247   : > { %v1763_v62 = vpop.f32.mrf.mxu0 }
 0x249   : > { %v753_v63 = vpop.f32.mrf.mxu0 }
 0x24a   : > { %v754_v0 = vadd.f32 %v753_v63, %v654_v55 }
 0x24b   : > { %v1768_v2 = vpop.f32.mrf.mxu0 }
 0x24c   : > { %v759_v3 = vadd.f32 %v754_v0, %v707_v59 }
 0x24d   : > { %v756_v4 = vpop.f32.mrf.mxu0 }
 0x24e   : > { %v767_v5 = vadd.f32 %v1679_v1, %v759_v3 }
 0x24f   : > { %v1769_v6 = vpop.f32.mrf.mxu0 }
 0x250   : > { %v768_v7 = vmul.f32 0.01, %v767_v5 }
 0x252   : > { %v2421_v8 = vmax.f32 %v767_v5, %v768_v7 }
 0x254   : > { %1803 = vmatmul.mubr.f32.vlgmr.msra.gmra.mxu1 %v2421_v8 }
 0x312   : > { %858 = sbr.rel (%p1680_p3) target bundleno = 1476 (0x5c4), region = 64 }
 0x314   : > { %v2424_v9 = vpop.f32.mrf.mxu1 }
 0x316   : > { %v1804_v10 = vpop.f32.mrf.mxu1 }
 0x317   : > { %v2120_v11 = vmov 2   ;;  %v2121_v12 = vmov 0   ;;  %v2122_v13 = vmov 3   ;;  %v2123_v14 = vmov 1   ;;  %v914_v57 = vld [vmem:[#allocation3] sm:$0xf] }
 0x318   : > { %1954 = vset.pattern.permute.xlu1 %v2120_v11  ;;  %1952 = vset.pattern.permute.xlu0 %v2121_v12  ;;  %v2124_v15 = vmov 0.0   ;;  %vm2125_vm9 = vmmov 0   ;;  %vm908_vm10 = vcmask 1040384   ;;  %vm910_vm11 = vcmask 1041408   ;;  %v1103_v7 = vld [vmem:[#allocation4] sm:$0xf] }
 0x319   : > { %885 = vperm.xlu1 %1954, %v2424_v9   ;;  %861 = vperm.xlu0 %1952, %v2424_v9   ;;  %vm912_vm12 = vcmask 1042432   ;;  %vm1106_vm13 = vcmask 60416   ;;  %v2126_v62 = vmov 1.0  }
 0x31a   : > { %1805 = vmatprep.subr.mxu0 %v2124_v15  ;;  %1810 = vmatprep.subr.mxu1 %v2124_v15 }
 0x31b   : > { %1807 = vmatprep.mubr.msk.f32.mxu0 %vm2125_vm9, %v2124_v15  ;;  %1812 = vmatprep.mubr.msk.f32.mxu1 %vm2125_vm9, %v2124_v15 }
 0x31c   : > { %1811 = vmatpush3.msk.msra.mxu1 %vm2333_vm5, %v2126_v62 }
 0x31d   : > { %1955 = vset.pattern.permute.xlu1 %v2122_v13  ;;  %1953 = vset.pattern.permute.xlu0 %v2123_v14 }
 0x31e   : > { %897 = vperm.xlu1 %1955, %v2424_v9   ;;  %873 = vperm.xlu0 %1953, %v2424_v9  }
 0x322   : > { %1956 = vset.pattern.permute.xlu0 %v2122_v13 }
 0x394   : > { %v886_v16 = vpop.permute.xlu1 %885  ;;  %v862_v17 = vpop.permute.xlu0 %861 }
 0x395   : > { %v888_v18 = vsel %vm2333_vm5, %v886_v16, -1e+30  ;;  %v864_v19 = vsel %vm2333_vm5, %v862_v17, -1e+30 }
 0x396   : > { %v889_v20 = vsel %vm612_vm6, %v888_v18, -inf  ;;  %v865_v21 = vsel %vm612_vm6, %v864_v19, -inf }
 0x397   : > { %v890_v22 = vrot.slane %v889_v20, 4  ;;  %v866_v23 = vrot.slane %v865_v21, 4 }
 0x399   : > { %v891_v24 = vmax.f32 %v889_v20, %v890_v22  ;;  %v867_v25 = vmax.f32 %v865_v21, %v866_v23  ;;  %v898_v26 = vpop.permute.xlu1 %897  ;;  %v874_v27 = vpop.permute.xlu0 %873 }
 0x39a   : > { %v900_v28 = vsel %vm2333_vm5, %v898_v26, -1e+30  ;;  %v876_v29 = vsel %vm2333_vm5, %v874_v27, -1e+30 }
 0x39b   : > { %v892_v30 = vrot.slane %v891_v24, 2  ;;  %v868_v33 = vrot.slane %v867_v25, 2  ;;  %v901_v35 = vsel %vm612_vm6, %v900_v28, -inf  ;;  %v877_v36 = vsel %vm612_vm6, %v876_v29, -inf }
 0x39c   : > { %v902_v37 = vrot.slane %v901_v35, 4  ;;  %v878_v38 = vrot.slane %v877_v36, 4 }
 0x39d   : > { %v869_v39 = vmax.f32 %v867_v25, %v868_v33  ;;  %v893_v43 = vmax.f32 %v891_v24, %v892_v30 }
 0x39e   : > { %v903_v41 = vmax.f32 %v901_v35, %v902_v37  ;;  %v879_v42 = vmax.f32 %v877_v36, %v878_v38 }
 0x39f   : > { %v870_v46 = vrot.slane %v869_v39, 1  ;;  %v894_v49 = vrot.slane %v893_v43, 1 }
 0x3a0   : > { %v904_v44 = vrot.slane %v903_v41, 2  ;;  %v880_v45 = vrot.slane %v879_v42, 2 }
 0x3a1   : > { %v871_v52 = vmax.f32 %v869_v39, %v870_v46  ;;  %v895_v54 = vmax.f32 %v893_v43, %v894_v49 }
 0x3a2   : > { %v905_v47 = vmax.f32 %v903_v41, %v904_v44  ;;  %v881_v48 = vmax.f32 %v879_v42, %v880_v45 }
 0x3a4   : > { %v906_v50 = vrot.slane %v905_v47, 1  ;;  %v882_v51 = vrot.slane %v881_v48, 1 }
 0x3a6   : > { %v883_v53 = vmax.f32 %v881_v48, %v882_v51  ;;  %v907_v55 = vmax.f32 %v905_v47, %v906_v50 }
 0x3a8   : > { %v909_v56 = vsel %vm908_vm10, %v871_v52, %v883_v53 }
 0x3a9   : > { %v911_v58 = vsel %vm910_vm11, %v909_v56, %v895_v54 }
 0x3aa   : > { %v913_v59 = vsel %vm912_vm12, %v911_v58, %v907_v55 }
 0x3ab   : > { %v915_v60 = vmax.f32 %v914_v57, %v913_v59 }
 0x3ad   : > { %v916_v61 = vsub.f32 %v914_v57, %v915_v60  ;;  %1806 = vmatpush3.xpose.msk.msra.mxu0 %vm612_vm6, %v915_v60  ;;  %1108 = vst.msk [vmem:[#allocation3] sm:$0xf] %vm1106_vm13, %v915_v60 }
 0x3af   : > { %v917_v5 = vmul.f32 1.442695, %v916_v61 }
 0x3b0   : > { %1808 = vmatmul.mubr.msk.f32.vlgmr.msra.gmra.mxu0 %vm612_vm6, %v2340_v32 }
 0x470   : > { %v991_v63 = vpop.f32.mrf.mxu0 }
 0x471   : > { %v995_v0 = vsub.f32 %v2424_v9, %v991_v63 }
 0x472   : > { %v1809_v1 = vpop.f32.mrf.mxu0 }
 0x473   : > { %v996_v2 = vmul.f32 1.442695, %v995_v0 }
 0x475   : > { %1957 = vpow2.f32 %v996_v2 }
 0x476   : > { %1959 = vpow2.f32 %v917_v5 }
 0x482   : > { %v1958_v3 = vpop.eup %1957 }
 0x483   : > { %998 = vxpose.xlu1.b32.start.end [1/1] (short) (narrow) %v1958_v3, 8  ;;  %v1960_v6 = vpop.eup %1959 }
 0x484   : > { %v1104_v10 = vmul.f32 %v1960_v6, %v1103_v7 }
 0x4ff   : > { %v1014_v4 = vpop.trf.xlu1 }
 0x500   : > { %1813 = vmatmul.mubr.msk.f32.vlgmr.msra.gmra.mxu1 %vm612_vm6, %v1014_v4 }
 0x5c0   : > { %v1099_v11 = vpop.f32.mrf.mxu1 }
 0x5c1   : > { %v1105_v12 = vadd.f32 %v1104_v10, %v1099_v11 }
 0x5c2   : > { %v1814_v31 = vpop.f32.mrf.mxu1 }
 0x5c3   : > { %1107 = vst.msk [vmem:[#allocation4] sm:$0xf] %vm1106_vm13, %v1105_v12 }
 0x5c4 PF: > { %p1109_p4 = scmp.eq.s32.totalorder %s2099_s21, 1  ;;  %p1685_p5 = scmp.ne.s32.totalorder %s2099_s21, 1 }
 0x5c6   : > { %1112 = sbr.rel (%p1685_p5) target bundleno = 2104 (0x838), region = 68 }
 0x5cb   : > { %1113 = vst [vmem:[%s418_s13] sm:$0xff] %v2421_v8  ;;  %v1120_v13 = vld [vmem:[#allocation3] sm:$0xf]  ;;  %v1114_v14 = vld [vmem:[#allocation4] sm:$0xf]  ;;  %v2127_v15 = vmov 0.0   ;;  %vm2128_vm14 = vmmov 0  }
 0x5cc   : > { %1815 = vmatprep.subr.mxu0 %v2127_v15  ;;  %1817 = vmatprep.mubr.msk.f32.mxu0 %vm2128_vm14, %v2127_v15  ;;  %v1115_v16 = vmax.f32 %v1114_v14, 1e-30  ;;  %v1277_v20 = vld [vmem:[#allocation2 + $0x8] sm:$0xf]  ;;  %v1321_v21 = vld [vmem:[%s2593_s8] sm:$0xf] }
 0x5cd   : > { %1816 = vmatpush3.xpose.msk.msra.mxu0 %vm612_vm6, %v1120_v13  ;;  %1820 = vmatprep.subr.mxu1 %v2127_v15  ;;  %vm1274_vm15 = vcmask 31744   ;;  %v1400_v42 = vld [vmem:[#allocation5] sm:$0xff] }
 0x5ce   : > { %1961 = vrcp.f32 %v1115_v16  ;;  %1822 = vmatprep.mubr.msk.f32.mxu1 %vm2128_vm14, %v2127_v15  ;;  %1825 = vmatprep.subr.bf16.mxu0 %v2127_v15 }
 0x5cf   : > { %1401 = vxpose.xlu0.c.b16.start.end [1/1] (short) (narrow) %v2347_v34, 16  ;;  %v1279_v34 = vsel %vm616_vm3, %v1277_v20, 0 }
 0x5d0   : > { %1818 = vmatmul.mubr.msk.f32.vlgmr.msra.gmra.mxu0 %vm612_vm6, %v2340_v32 }
 0x5d1   : > { %1827 = vmatprep.mubr.msk.bf16.mxu0 %vm2128_vm14, %v2127_v15  ;;  %1826 = vmatpush3.bf16.msra.mxu0 %v1279_v34 }
 0x5d4   : > { %1828 = vmatmul.mubr.msk.bf16.vlgmr.msra.gmra.mxu0 %vm612_vm6, %v2359_v40 }
 0x5db   : > { %v1962_v8 = vpop.eup %1961 }
 0x5dc   : > { %v1117_v17 = vmul.f32 %v1962_v8, %v1115_v16 }
 0x5de   : > { %v1118_v18 = vsub.f32 2.0, %v1117_v17 }
 0x5e0   : > { %v1119_v19 = vmul.f32 %v1962_v8, %v1118_v18 }
 0x5e2   : > { %1821 = vmatpush3.xpose.msk.msra.mxu1 %vm612_vm6, %v1119_v19 }
 0x5e3   : > { %1831 = vmatprep.subr.mxu1 %v2127_v15 }
 0x5e5   : > { %1823 = vmatmul.mubr.msk.f32.vlgmr.msra.gmra.mxu1 %vm612_vm6, %v2340_v32 }
 0x5e6   : > { %1833 = vmatprep.mubr.msk.f32.mxu1 %vm2128_vm14, %v2127_v15  ;;  %1832 = vmatpush3.msk.msra.mxu1 %vm616_vm3, %v1321_v21 }
 0x5e7   : > { %1836 = vmatprep.subr.bf16.mxu1 %v2127_v15 }
 0x631   : > { %v1409_v41 = vpop.trf.xlu0 }
 0x690   : > { %v1193_v22 = vpop.f32.mrf.mxu0 }
 0x691   : > { %v1270_v32 = vsub.f32 %v2424_v9, %v1193_v22 }
 0x692   : > { %v1819_v23 = vpop.f32.mrf.mxu0 }
 0x693   : > { %v1271_v24 = vmul.f32 1.442695, %v1270_v32 }
 0x694   : > { %v1315_v29 = vpop.f32.mrf.mxu0 }
 0x695   : > { %1963 = vpow2.f32 %v1271_v24 }
 0x696   : > { %v1829_v30 = vpop.f32.mrf.mxu0 }
 0x698   : > { %v1318_v33 = vpop.f32.mrf.mxu0 }
 0x69a   : > { %v1830_v35 = vpop.f32.mrf.mxu0 }
 0x6a2   : > { %v1964_v25 = vpop.eup %1963 }
 0x6a5   : > { %v1266_v26 = vpop.f32.mrf.mxu1 }
 0x6a6   : > { %v1273_v27 = vmul.f32 %v1964_v25, %v1266_v26 }
 0x6a7   : > { %v1824_v28 = vpop.f32.mrf.mxu1 }
 0x6a8   : > { %v1275_v40 = vsel %vm1274_vm15, %v1273_v27, 0.0  ;;  %1834 = vmatmul.mubr.msk.f32.vlgmr.msra.gmra.mxu1 %vm1274_vm15, %v1273_v27 }
 0x6a9   : > { %1276 = vst [vmem:[%s425_s9] sm:$0xff] %v1275_v40  ;;  %1838 = vmatprep.mubr.msk.bf16.mxu1 %vm2128_vm14, %v2127_v15 }
 0x768   : > { %v1394_v36 = vpop.f32.mrf.mxu1 }
 0x769   : > { %v1398_v9 = vmul.f32 %v1394_v36, %v1315_v29 }
 0x76a   : > { %v1835_v37 = vpop.f32.mrf.mxu1 }
 0x76b   : > { %v1399_v38 = vpack.c.bf16 %v1398_v9, %v1398_v9 }
 0x76d   : > { %v1421_v39 = vsel %vm616_vm3, %v1399_v38, 0 }
 0x76e   : > { %1837 = vmatpush3.bf16.msra.mxu1 %v1421_v39 }
 0x771   : > { %1839 = vmatmul.mubr.msk.bf16.vlgmr.msra.gmra.mxu1 %vm612_vm6, %v1409_v41 }
 0x831   : > { %v1457_v43 = vpop.f32.mrf.mxu1 }
 0x832   : > { %v1463_v44 = vadd.f32 %v1457_v43, %v1400_v42 }
 0x833   : > { %v1840_v45 = vpop.f32.mrf.mxu1 }
 0x834   : > { %1464 = vst [vmem:[#allocation5] sm:$0xff] %v1463_v44 }
 0x835   : > { %v1460_v46 = vpop.f32.mrf.mxu1 }
 0x837   : > { %v1841_v47 = vpop.f32.mrf.mxu1 }
 0x838 PF: > { %p1465_p7 = scmp.eq.s32.totalorder %s2095_s20, 1 }
 0x83a   : > { %p1466_p9 = pnand %p1465_p7, %p1109_p4 }
 0x83c   : > { %1469 = sbr.rel (%p1466_p9) target bundleno = 2115 (0x843), region = 72 }
 0x841   : > { %v1470_v48 = vld [vmem:[#allocation5] sm:$0xff] }
 0x842   : > { %1471 = vst [vmem:[#allocation6] sm:$0xff] %v1470_v48 }
 0x843 PF: > { %s2620_s15 = sadd.s32 4294967295, %s2111_s24   ;;  %s1496_s27 = smul.u32 %s2095_s20, %s2099_s21 }
 0x844   : > { %s2486_s16 = sand.u32 1, %s2620_s15   ;;  %s1503_s26 = sshll.u32 %s418_s13, 4  ;;  %s1504_s26 = int_to_ptr.vmem [resolvable:$true] %s1503_s26 }
 0x845   : > { %s2492_s28 = sshll.u32 %s1496_s27, 7  ;;  %s1473_s29 = scalar_lea.sflag [#allocation9], %s2486_s16 }
 0x846   : > { %s1501_s23 = scalar_lea.hbm %s2595_s10, %s2492_s28  ;;  %s1965_s19 = scalar_lea.vmem %s1504_s26, 128 }
 0x847   : > { %p1966_p10 = scmp.ne.s32.totalorder %s1504_s26, %s1965_s19  ;;  %s2129_s17 = smov [#allocation8]  }
 0x848   : > { %s1969_s14 = sshll.u32 %s2129_s17, 4  ;;  %s1970_s14 = int_to_ptr.vmem [resolvable:$false] %s1969_s14 }
 0x849   : > { %p1967_p11 = pnand %p1966_p10, %p2252_p6  ;;  %s1971_s20 = scalar_lea.vmem %s1970_s14, 256 }
 0x84a   : > { %p1972_p13 = scmp.lt.s32.totalorder %s1504_s26, %s1970_s14  ;;  %p1973_p0 = scmp.lt.s32.totalorder %s1971_s20, %s1965_s19 }
 0x84b   : > { %p1968_p12 = pneg %p1967_p11 }
 0x84c   : > { %p1974_p1 = por %p1973_p0, %p1972_p13 }
 0x84e   : > { %p1975_p3 = pnand %p1974_p1, %p1968_p12 }
 0x850   : > { %1978 = shalt.err (!%p1975_p3)
}
 0x851   : > { %s1979_s21 = scalar_lea.hbm %s1501_s23, 128  ;;  %s1983_s27 = scalar_lea.hbm %s2595_s10, 256 }
 0x852   : > { %p1980_p4 = scmp.ne.s32.totalorder %s1501_s23, %s1979_s21  ;;  %p1984_p9 = scmp.lt.s32.totalorder %s1501_s23, %s2595_s10 }
 0x853   : > { %p1985_p10 = scmp.lt.s32.totalorder %s1983_s27, %s1979_s21 }
 0x854   : > { %p1981_p5 = pnand %p1980_p4, %p2252_p6 }
 0x855   : > { %p1986_p11 = por %p1985_p10, %p1984_p9 }
 0x856   : > { %p1982_p7 = pneg %p1981_p5 }
 0x858   : > { %p1987_p8 = pnand %p1986_p11, %p1982_p7 }
 0x85a   : > { %1990 = shalt.err (!%p1987_p8)
}
 0x85b   : > { %1844 = dma.vmem_to_hbm [thread:$0]  (%p2252_p6), %s1504_s26, 128, %s1501_s23, %s1473_s29  }
 0x85c   : > { %s2517_s14 = scalar_lea.hbm %s2596_s11, %s2492_s28  ;;  %s2130_s20 = smov [#allocation6]  }
 0x85d   : > { %s1489_s13 = sshll.u32 %s2130_s20, 4  ;;  %s1517_s21 = sshll.u32 %s425_s9, 4  ;;  %s1490_s13 = int_to_ptr.vmem [resolvable:$true] %s1489_s13  ;;  %s2521_s21 = int_to_ptr.vmem [resolvable:$true] %s1517_s21 }
 0x85e   : > { %s1991_s15 = scalar_lea.vmem %s1490_s13, 128  ;;  %p1998_p0 = scmp.lt.s32.totalorder %s1490_s13, %s1490_s13 }
 0x85f   : > { %p1992_p8 = scmp.ne.s32.totalorder %s1490_s13, %s1991_s15  ;;  %p1999_p1 = scmp.lt.s32.totalorder %s1991_s15, %s1991_s15 }
 0x861   : > { %p1993_p12 = pnand %p1992_p8, %p2243_p2  ;;  %p2000_p3 = por %p1999_p1, %p1998_p0 }
 0x863   : > { %p1994_p13 = pneg %p1993_p12 }
 0x865   : > { %p2001_p4 = pnand %p2000_p3, %p1994_p13 }
 0x867   : > { %2004 = shalt.err (!%p2001_p4)
}
 0x868   : > { %s2621_s23 = sld [smem:[#allocation21_spill]]  ;;  %s2015_s9 = scalar_lea.vmem %s2521_s21, 128 }
 0x869   : > { %p2016_p5 = scmp.ne.s32.totalorder %s2521_s21, %s2015_s9  ;;  %s2131_s25 = smov [#allocation10]  }
 0x86a   : > { %s2019_s27 = sshll.u32 %s2131_s25, 4  ;;  %s2020_s27 = int_to_ptr.vmem [resolvable:$false] %s2019_s27 }
 0x86b   : > { %p2017_p7 = pnand %p2016_p5, %p2252_p6  ;;  %s2021_s22 = scalar_lea.vmem %s2020_s27, 256 }
 0x86c   : > { %p2022_p10 = scmp.lt.s32.totalorder %s2521_s21, %s2020_s27  ;;  %p2023_p11 = scmp.lt.s32.totalorder %s2021_s22, %s2015_s9 }
 0x86d   : > { %p2018_p9 = pneg %p2017_p7 }
 0x86e   : > { %1843 = dma.vmem_to_hbm [thread:$0]  (%p2243_p2), %s1490_s13, 128, %s2621_s23, [#allocation7]  }
 0x86f   : > { %p2024_p8 = por %p2023_p11, %p2022_p10 }
 0x871   : > { %p2025_p12 = pnand %p2024_p8, %p2018_p9 }
 0x873   : > { %2028 = shalt.err (!%p2025_p12)
}
 0x874   : > { %s2029_s18 = scalar_lea.hbm %s2517_s14, 128  ;;  %s2033_s20 = scalar_lea.hbm %s2596_s11, 256 }
 0x875   : > { %p2030_p13 = scmp.ne.s32.totalorder %s2517_s14, %s2029_s18  ;;  %p2034_p3 = scmp.lt.s32.totalorder %s2517_s14, %s2596_s11 }
 0x876   : > { %p2035_p4 = scmp.lt.s32.totalorder %s2033_s20, %s2029_s18 }
 0x877   : > { %p2031_p0 = pnand %p2030_p13, %p2252_p6 }
 0x878   : > { %p2036_p5 = por %p2035_p4, %p2034_p3 }
 0x879   : > { %p2032_p1 = pneg %p2031_p0 }
 0x87b   : > { %p2037_p7 = pnand %p2036_p5, %p2032_p1 }
 0x87d   : > { %2040 = shalt.err (!%p2037_p7)
}
 0x87e   : > { %1845 = dma.vmem_to_hbm [thread:$0]  (%p2252_p6), %s2521_s21, 128, %s2517_s14, %s1473_s29  }
 0x87f   : > { %2074 = dma.done.wait (%p2243_p2), [#allocation7], 128  }
 0x880   : > { %2076 = vsyncadd (%p2243_p2), [#allocation7], 4294967168 }
 0x881 PF: > { %s2622_s26 = sld [smem:[#allocation19_spill]]  ;;  %p1859_p9 = scmp.ge.s32.totalorder %s2111_s24, 2 }
 0x882   : > { %s2623_s28 = sadd.s32 4294967294, %s2111_s24  }
 0x883   : > { %s1533_s23 = sand.u32 1, %s2623_s28  }
 0x884   : > { %s1534_s12 = scalar_lea.sflag [#allocation9], %s1533_s23 }
 0x887   : > { %p2624_p10 = scmp.ne.s32.totalorder %s2622_s26, 0 }
 0x889   : > { %p1851_p11 = pnand %p1859_p9, %p2624_p10 }
 0x88b   : > { %p1852_p8 = pneg %p1851_p11 }
 0x88d   : > { %2078 = dma.done.wait (%p1852_p8), %s1534_s12, 256  }
 0x88e   : > { %2080 = vsyncadd (%p1852_p8), %s1534_s12, 4294967040  ;;  %s26_s24 = sadd.s32 1, %s2111_s24   ;;  %s2625_s17 = sld [smem:[#allocation13_spill]] }
 0x88f   : > { %p23_p6 = scmp.ge.s32.totalorder %s26_s24, 6   ;;  %s2626_s18 = sld [smem:[#allocation14_spill]] }
 0x890   : > { %s2627_s19 = sld [smem:[#allocation20_spill]] }
 0x891   : > { %s2628_s20 = sld [smem:[#allocation15_spill]]  ;;  %25 = sbr.rel (!%p23_p6) target bundleno = 8 (0x8), region = 137 }
 0x892   : > { %s2629_s21 = sld [smem:[#allocation16_spill]] }
 0x893   : > { %s2630_s22 = sld [smem:[#allocation17_spill]] }
 0x894   : > { %s2631_s23 = sld [smem:[#allocation18_spill]] }
 0x896   :  { %1548 = vsyncpa [#allocation7], 1 }
 0x897   :  { %1550 = vsyncpa [#allocation7 + $0x1], 1 }
 0x898   :  { %1551 = vsyncpa [#allocation9], 1 }
 0x899   :  { %1553 = vsyncpa [#allocation9 + $0x1], 1 }

</bundles_post_ra>
